<compile_context>
chip_gen: v7x
topology: tpu7x:2x2x1
jax: 0.10.0
libtpu: 0.0.40
codegen_flags: <defaults>
</compile_context>

<pallas_src>
import jax
import jax.numpy as jnp
from jax.experimental import pallas as pl
from jax.experimental.pallas import tpu as pltpu

N_HIDDEN = 5
SUBLANES = 8          # batch rows per vreg sublane group
LANE_CHUNK = 512      # in-kernel lane chunk (4 vregs per live array -> no spills)

# Flat SMEM parameter layout.
IDX_W1 = 0                         # w1[0, :]            (5)
IDX_B1 = IDX_W1 + N_HIDDEN         # b1                  (5)
IDX_W2 = IDX_B1 + N_HIDDEN         # w2[k, j] at k*5+j   (25)
IDX_B2 = IDX_W2 + N_HIDDEN * N_HIDDEN   # b2             (5)
IDX_W3 = IDX_B2 + N_HIDDEN         # w3[:, 0]            (5)
IDX_B3 = IDX_W3 + N_HIDDEN         # b3                  (1)
N_PARAMS = IDX_B3 + 1              # 46


def _elu(x):
    # PyTorch ELU(alpha=1): x if x > 0 else expm1(x).
    # exp argument is clamped to <= 0 so the unselected branch never overflows
    # (also keeps garbage tail lanes of partial blocks finite).
    # TODO(synk): jnp.expm1 would be slightly more precise for x -> 0-.
    return jnp.where(x > 0, x, jnp.exp(jnp.minimum(x, 0.0)) - 1.0)


def _read_params(p_ref):
    """Read all 46 scalars out of SMEM once (hoisted above the chunk loop)."""
    w1 = [p_ref[IDX_W1 + k] for k in range(N_HIDDEN)]
    b1 = [p_ref[IDX_B1 + k] for k in range(N_HIDDEN)]
    w2 = [[p_ref[IDX_W2 + k * N_HIDDEN + j] for j in range(N_HIDDEN)]
          for k in range(N_HIDDEN)]
    b2 = [p_ref[IDX_B2 + j] for j in range(N_HIDDEN)]
    w3 = [p_ref[IDX_W3 + j] for j in range(N_HIDDEN)]
    b3 = p_ref[IDX_B3]
    return {"w1": w1, "b1": b1, "w2": w2, "b2": b2, "w3": w3, "b3": b3}


def _forward_chunk(w, x):
    """Whole MLP on one dense (8, chunk) slab. Pure VPU/EUP; weights are scalar splats."""
    # Layer 1: Linear(1,5) + ELU  (K=1 -> broadcast MACs, no MXU).
    h = [_elu(w["w1"][k] * x + w["b1"][k]) for k in range(N_HIDDEN)]
    # Dropout(0.1): identity in eval mode.

    # Layer 2: Linear(5,5) + ELU, fused with layer 3: Linear(5,1).
    # h2_j is consumed immediately into the output accumulator, never materialized.
    out = None
    for j in range(N_HIDDEN):
        a = h[0] * w["w2"][0][j]
        for k in range(1, N_HIDDEN):
            a = a + h[k] * w["w2"][k][j]
        hj = _elu(a + w["b2"][j])
        # Dropout(0.1): identity in eval mode.
        term = w["w3"][j] * hj
        out = term if out is None else out + term
    return out + w["b3"]


def mlp_kernel(p_ref, x_ref, o_ref):
    # p_ref: (N_PARAMS,) f32 in SMEM (scalar prefetch).  x_ref/o_ref: (8, tl) f32 in VMEM.
    w = _read_params(p_ref)
    tl = x_ref.shape[1]
    chunk = min(LANE_CHUNK, tl)
    n_full = tl // chunk
    rem = tl - n_full * chunk

    def do(off, width):
        o_ref[:, pl.ds(off, width)] = _forward_chunk(w, x_ref[:, pl.ds(off, width)])

    if n_full == 1:
        do(0, chunk)
    else:
        @pl.loop(0, n_full)
        def _(c):
            do(pl.multiple_of(c * chunk, chunk), chunk)
    if rem:
        do(n_full * chunk, rem)


def pack_params(p):
    """Pack all parameters into a flat (46,) f32 vector. Call ONCE at init time.
    Params are stored (in, out); equivalent to PyTorch's (out, in) nn.Linear weights."""
    return jnp.concatenate([
        p["w1"][0, :],          # (5,)
        p["b1"],                # (5,)
        p["w2"].reshape(-1),    # (25,) row-major: w2[k, j] at k*5+j
        p["b2"],                # (5,)
        p["w3"][:, 0],          # (5,)
        p["b3"],                # (1,)
    ]).astype(jnp.float32)


def neural_network_forward(x, packed_params, *, block_b=131072):
    """x: (B, 1) float32. packed_params: (46,) f32 from pack_params (packed once).

    block_b = batch elements per grid step. At the default, each in/out block is
    (8, 16384) f32 = 512 KiB (~2 MiB double-buffered) -> comfortably inside every
    generation's VMEM (incl. v7x), while fully amortizing per-grid-step overhead.
    """
    B = x.shape[0]
    assert x.ndim == 2 and x.shape[1] == 1

    # Lay the batch across sublanes AND lanes: (B,) -> (8, cols), row-major (free).
    Bp = -(-B // SUBLANES) * SUBLANES
    xf = x.reshape(B)
    if Bp != B:
        xf = jnp.pad(xf, (0, Bp - B))   # only for B % 8 != 0; no per-block padding ever
    cols = Bp // SUBLANES
    x2 = xf.reshape(SUBLANES, cols)

    max_tl = max(LANE_CHUNK, (block_b // SUBLANES // LANE_CHUNK) * LANE_CHUNK)
    if cols < 2 * 128:
        tl = cols                       # single full-array block (128-divisibility waived)
    else:
        # >= 2 blocks so both v7x TensorCores get work; block widths 128-aligned.
        half = -(-cols // 2)
        tl = min(max_tl, -(-half // 128) * 128)
    grid_n = pl.cdiv(cols, tl)          # last block may be partial; OOB lanes are masked

    out2 = pl.pallas_call(
        mlp_kernel,
        out_shape=jax.ShapeDtypeStruct((SUBLANES, cols), jnp.float32),
        grid_spec=pltpu.PrefetchScalarGridSpec(
            num_scalar_prefetch=1,                       # params -> SMEM scalars
            grid=(grid_n,),
            in_specs=[pl.BlockSpec((SUBLANES, tl), lambda i, p: (0, i))],
            out_specs=pl.BlockSpec((SUBLANES, tl), lambda i, p: (0, i)),
        ),
        compiler_params=pltpu.CompilerParams(
            dimension_semantics=("parallel",)),          # batch blocks shard across TCs
        cost_estimate=pl.CostEstimate(
            flops=90 * Bp, transcendentals=10 * Bp, bytes_accessed=8 * Bp),
    )(packed_params, x2)

    return out2.reshape(Bp)[:B].reshape(B, 1)


def init_params(key):
    """Deterministic init mimicking torch.nn.Linear (stored as (in, out))."""
    k1, k2, k3, k4, k5, k6 = jax.random.split(key, 6)

    def linear_init(kw, kb, fan_in, fan_out):
        bound = 1.0 / jnp.sqrt(float(fan_in))
        w = jax.random.uniform(kw, (fan_in, fan_out), jnp.float32, -bound, bound)
        b = jax.random.uniform(kb, (fan_out,), jnp.float32, -bound, bound)
        return w, b

    w1, b1 = linear_init(k1, k2, 1, N_HIDDEN)
    w2, b2 = linear_init(k3, k4, N_HIDDEN, N_HIDDEN)
    w3, b3 = linear_init(k5, k6, N_HIDDEN, 1)
    return {"w1": w1, "b1": b1, "w2": w2, "b2": b2, "w3": w3, "b3": b3}


def reference_forward(x, p):
    h1 = _elu(x @ p["w1"] + p["b1"])
    h2 = _elu(h1 @ p["w2"] + p["b2"])
    return h2 @ p["w3"] + p["b3"]


if __name__ == "__main__":
    key = jax.random.PRNGKey(0)
    kx1, kx2, kx3, kp = jax.random.split(key, 4)

    params = init_params(kp)
    packed = pack_params(params)            # packed ONCE, outside the per-call path

    # 1) Tiny batch: single (8,1) full-array block.
    x1 = jax.random.normal(kx1, (8, 1), dtype=jnp.float32)
    o1 = jax.block_until_ready(neural_network_forward(x1, packed))
    assert o1.shape == (8, 1)
    assert jnp.allclose(o1, reference_forward(x1, params), atol=1e-5, rtol=1e-5), \
        "mismatch vs JAX reference (B=8)"

    # 2) B not a multiple of 8: exercises the tiny alignment pad + full-array block.
    x2 = jax.random.normal(kx2, (300, 1), dtype=jnp.float32)
    o2 = jax.block_until_ready(neural_network_forward(x2, packed))
    assert o2.shape == (300, 1)
    assert jnp.allclose(o2, reference_forward(x2, params), atol=1e-5, rtol=1e-5), \
        "mismatch vs JAX reference (B=300)"

    # 3) Gridded path with a deliberately small block: >=2 blocks (v7x 2-TC sharding),
    #    in-kernel lane-chunk loop, and a partial (masked) tail block.
    x3 = jax.random.normal(kx3, (18432, 1), dtype=jnp.float32)
    o3 = jax.block_until_ready(neural_network_forward(x3, packed, block_b=8192))
    assert o3.shape == (18432, 1)
    assert jnp.allclose(o3, reference_forward(x3, params), atol=1e-5, rtol=1e-5), \
        "mismatch vs JAX reference (B=18432)"

    print("KERNEL_OK")
</pallas_src>

<mosaic_0001>
module attributes {stable_mosaic.version = 11 : i64} {
  func.func @mlp_kernel(%arg0: i32, %arg1: memref<46xf32, #tpu.memory_space<smem>>, %arg2: memref<8x1xf32, #tpu.memory_space<vmem>>, %arg3: memref<8x1xf32, #tpu.memory_space<vmem>>) attributes {dimension_semantics = [#tpu.dimension_semantics<parallel>], iteration_bounds = array<i64: 1>, scalar_prefetch = 1 : i64, scratch_operands = 0 : i64, tpu.core_type = #tpu.core_type<tc>, window_params = [{transform_indices = @transform_0, window_bounds = array<i64: 8, 1>}, {transform_indices = @transform_1, window_bounds = array<i64: 8, 1>}]} {
    %c0 = arith.constant 0 : index
    %0 = memref.load %arg1[%c0] : memref<46xf32, #tpu.memory_space<smem>>
    %c1 = arith.constant 1 : index
    %1 = memref.load %arg1[%c1] : memref<46xf32, #tpu.memory_space<smem>>
    %c2 = arith.constant 2 : index
    %2 = memref.load %arg1[%c2] : memref<46xf32, #tpu.memory_space<smem>>
    %c3 = arith.constant 3 : index
    %3 = memref.load %arg1[%c3] : memref<46xf32, #tpu.memory_space<smem>>
    %c4 = arith.constant 4 : index
    %4 = memref.load %arg1[%c4] : memref<46xf32, #tpu.memory_space<smem>>
    %c5 = arith.constant 5 : index
    %5 = memref.load %arg1[%c5] : memref<46xf32, #tpu.memory_space<smem>>
    %c6 = arith.constant 6 : index
    %6 = memref.load %arg1[%c6] : memref<46xf32, #tpu.memory_space<smem>>
    %c7 = arith.constant 7 : index
    %7 = memref.load %arg1[%c7] : memref<46xf32, #tpu.memory_space<smem>>
    %c8 = arith.constant 8 : index
    %8 = memref.load %arg1[%c8] : memref<46xf32, #tpu.memory_space<smem>>
    %c9 = arith.constant 9 : index
    %9 = memref.load %arg1[%c9] : memref<46xf32, #tpu.memory_space<smem>>
    %c10 = arith.constant 10 : index
    %10 = memref.load %arg1[%c10] : memref<46xf32, #tpu.memory_space<smem>>
    %c11 = arith.constant 11 : index
    %11 = memref.load %arg1[%c11] : memref<46xf32, #tpu.memory_space<smem>>
    %c12 = arith.constant 12 : index
    %12 = memref.load %arg1[%c12] : memref<46xf32, #tpu.memory_space<smem>>
    %c13 = arith.constant 13 : index
    %13 = memref.load %arg1[%c13] : memref<46xf32, #tpu.memory_space<smem>>
    %c14 = arith.constant 14 : index
    %14 = memref.load %arg1[%c14] : memref<46xf32, #tpu.memory_space<smem>>
    %c15 = arith.constant 15 : index
    %15 = memref.load %arg1[%c15] : memref<46xf32, #tpu.memory_space<smem>>
    %c16 = arith.constant 16 : index
    %16 = memref.load %arg1[%c16] : memref<46xf32, #tpu.memory_space<smem>>
    %c17 = arith.constant 17 : index
    %17 = memref.load %arg1[%c17] : memref<46xf32, #tpu.memory_space<smem>>
    %c18 = arith.constant 18 : index
    %18 = memref.load %arg1[%c18] : memref<46xf32, #tpu.memory_space<smem>>
    %c19 = arith.constant 19 : index
    %19 = memref.load %arg1[%c19] : memref<46xf32, #tpu.memory_space<smem>>
    %c20 = arith.constant 20 : index
    %20 = memref.load %arg1[%c20] : memref<46xf32, #tpu.memory_space<smem>>
    %c21 = arith.constant 21 : index
    %21 = memref.load %arg1[%c21] : memref<46xf32, #tpu.memory_space<smem>>
    %c22 = arith.constant 22 : index
    %22 = memref.load %arg1[%c22] : memref<46xf32, #tpu.memory_space<smem>>
    %c23 = arith.constant 23 : index
    %23 = memref.load %arg1[%c23] : memref<46xf32, #tpu.memory_space<smem>>
    %c24 = arith.constant 24 : index
    %24 = memref.load %arg1[%c24] : memref<46xf32, #tpu.memory_space<smem>>
    %c25 = arith.constant 25 : index
    %25 = memref.load %arg1[%c25] : memref<46xf32, #tpu.memory_space<smem>>
    %c26 = arith.constant 26 : index
    %26 = memref.load %arg1[%c26] : memref<46xf32, #tpu.memory_space<smem>>
    %c27 = arith.constant 27 : index
    %27 = memref.load %arg1[%c27] : memref<46xf32, #tpu.memory_space<smem>>
    %c28 = arith.constant 28 : index
    %28 = memref.load %arg1[%c28] : memref<46xf32, #tpu.memory_space<smem>>
    %c29 = arith.constant 29 : index
    %29 = memref.load %arg1[%c29] : memref<46xf32, #tpu.memory_space<smem>>
    %c30 = arith.constant 30 : index
    %30 = memref.load %arg1[%c30] : memref<46xf32, #tpu.memory_space<smem>>
    %c31 = arith.constant 31 : index
    %31 = memref.load %arg1[%c31] : memref<46xf32, #tpu.memory_space<smem>>
    %c32 = arith.constant 32 : index
    %32 = memref.load %arg1[%c32] : memref<46xf32, #tpu.memory_space<smem>>
    %c33 = arith.constant 33 : index
    %33 = memref.load %arg1[%c33] : memref<46xf32, #tpu.memory_space<smem>>
    %c34 = arith.constant 34 : index
    %34 = memref.load %arg1[%c34] : memref<46xf32, #tpu.memory_space<smem>>
    %c35 = arith.constant 35 : index
    %35 = memref.load %arg1[%c35] : memref<46xf32, #tpu.memory_space<smem>>
    %c36 = arith.constant 36 : index
    %36 = memref.load %arg1[%c36] : memref<46xf32, #tpu.memory_space<smem>>
    %c37 = arith.constant 37 : index
    %37 = memref.load %arg1[%c37] : memref<46xf32, #tpu.memory_space<smem>>
    %c38 = arith.constant 38 : index
    %38 = memref.load %arg1[%c38] : memref<46xf32, #tpu.memory_space<smem>>
    %c39 = arith.constant 39 : index
    %39 = memref.load %arg1[%c39] : memref<46xf32, #tpu.memory_space<smem>>
    %c40 = arith.constant 40 : index
    %40 = memref.load %arg1[%c40] : memref<46xf32, #tpu.memory_space<smem>>
    %c41 = arith.constant 41 : index
    %41 = memref.load %arg1[%c41] : memref<46xf32, #tpu.memory_space<smem>>
    %c42 = arith.constant 42 : index
    %42 = memref.load %arg1[%c42] : memref<46xf32, #tpu.memory_space<smem>>
    %c43 = arith.constant 43 : index
    %43 = memref.load %arg1[%c43] : memref<46xf32, #tpu.memory_space<smem>>
    %c44 = arith.constant 44 : index
    %44 = memref.load %arg1[%c44] : memref<46xf32, #tpu.memory_space<smem>>
    %c45 = arith.constant 45 : index
    %45 = memref.load %arg1[%c45] : memref<46xf32, #tpu.memory_space<smem>>
    %c0_0 = arith.constant 0 : index
    %c0_1 = arith.constant 0 : index
    %46 = vector.load %arg2[%c0_0, %c0_1] : memref<8x1xf32, #tpu.memory_space<vmem>>, vector<8x1xf32>
    %47 = vector.broadcast %0 : f32 to vector<8x1xf32>
    %48 = arith.mulf %47, %46 : vector<8x1xf32>
    %49 = vector.broadcast %5 : f32 to vector<8x1xf32>
    %50 = arith.addf %48, %49 : vector<8x1xf32>
    %cst = arith.constant 0.000000e+00 : f32
    %51 = vector.broadcast %cst : f32 to vector<8x1xf32>
    %52 = arith.cmpf ogt, %50, %51 : vector<8x1xf32>
    %cst_2 = arith.constant 0.000000e+00 : f32
    %53 = vector.broadcast %cst_2 : f32 to vector<8x1xf32>
    %54 = arith.minimumf %50, %53 : vector<8x1xf32>
    %55 = math.exp %54 : vector<8x1xf32>
    %cst_3 = arith.constant 1.000000e+00 : f32
    %56 = vector.broadcast %cst_3 : f32 to vector<8x1xf32>
    %57 = arith.subf %55, %56 : vector<8x1xf32>
    %58 = arith.select %52, %50, %57 : vector<8x1xi1>, vector<8x1xf32>
    %59 = vector.broadcast %1 : f32 to vector<8x1xf32>
    %60 = arith.mulf %59, %46 : vector<8x1xf32>
    %61 = vector.broadcast %6 : f32 to vector<8x1xf32>
    %62 = arith.addf %60, %61 : vector<8x1xf32>
    %cst_4 = arith.constant 0.000000e+00 : f32
    %63 = vector.broadcast %cst_4 : f32 to vector<8x1xf32>
    %64 = arith.cmpf ogt, %62, %63 : vector<8x1xf32>
    %cst_5 = arith.constant 0.000000e+00 : f32
    %65 = vector.broadcast %cst_5 : f32 to vector<8x1xf32>
    %66 = arith.minimumf %62, %65 : vector<8x1xf32>
    %67 = math.exp %66 : vector<8x1xf32>
    %cst_6 = arith.constant 1.000000e+00 : f32
    %68 = vector.broadcast %cst_6 : f32 to vector<8x1xf32>
    %69 = arith.subf %67, %68 : vector<8x1xf32>
    %70 = arith.select %64, %62, %69 : vector<8x1xi1>, vector<8x1xf32>
    %71 = vector.broadcast %2 : f32 to vector<8x1xf32>
    %72 = arith.mulf %71, %46 : vector<8x1xf32>
    %73 = vector.broadcast %7 : f32 to vector<8x1xf32>
    %74 = arith.addf %72, %73 : vector<8x1xf32>
    %cst_7 = arith.constant 0.000000e+00 : f32
    %75 = vector.broadcast %cst_7 : f32 to vector<8x1xf32>
    %76 = arith.cmpf ogt, %74, %75 : vector<8x1xf32>
    %cst_8 = arith.constant 0.000000e+00 : f32
    %77 = vector.broadcast %cst_8 : f32 to vector<8x1xf32>
    %78 = arith.minimumf %74, %77 : vector<8x1xf32>
    %79 = math.exp %78 : vector<8x1xf32>
    %cst_9 = arith.constant 1.000000e+00 : f32
    %80 = vector.broadcast %cst_9 : f32 to vector<8x1xf32>
    %81 = arith.subf %79, %80 : vector<8x1xf32>
    %82 = arith.select %76, %74, %81 : vector<8x1xi1>, vector<8x1xf32>
    %83 = vector.broadcast %3 : f32 to vector<8x1xf32>
    %84 = arith.mulf %83, %46 : vector<8x1xf32>
    %85 = vector.broadcast %8 : f32 to vector<8x1xf32>
    %86 = arith.addf %84, %85 : vector<8x1xf32>
    %cst_10 = arith.constant 0.000000e+00 : f32
    %87 = vector.broadcast %cst_10 : f32 to vector<8x1xf32>
    %88 = arith.cmpf ogt, %86, %87 : vector<8x1xf32>
    %cst_11 = arith.constant 0.000000e+00 : f32
    %89 = vector.broadcast %cst_11 : f32 to vector<8x1xf32>
    %90 = arith.minimumf %86, %89 : vector<8x1xf32>
    %91 = math.exp %90 : vector<8x1xf32>
    %cst_12 = arith.constant 1.000000e+00 : f32
    %92 = vector.broadcast %cst_12 : f32 to vector<8x1xf32>
    %93 = arith.subf %91, %92 : vector<8x1xf32>
    %94 = arith.select %88, %86, %93 : vector<8x1xi1>, vector<8x1xf32>
    %95 = vector.broadcast %4 : f32 to vector<8x1xf32>
    %96 = arith.mulf %95, %46 : vector<8x1xf32>
    %97 = vector.broadcast %9 : f32 to vector<8x1xf32>
    %98 = arith.addf %96, %97 : vector<8x1xf32>
    %cst_13 = arith.constant 0.000000e+00 : f32
    %99 = vector.broadcast %cst_13 : f32 to vector<8x1xf32>
    %100 = arith.cmpf ogt, %98, %99 : vector<8x1xf32>
    %cst_14 = arith.constant 0.000000e+00 : f32
    %101 = vector.broadcast %cst_14 : f32 to vector<8x1xf32>
    %102 = arith.minimumf %98, %101 : vector<8x1xf32>
    %103 = math.exp %102 : vector<8x1xf32>
    %cst_15 = arith.constant 1.000000e+00 : f32
    %104 = vector.broadcast %cst_15 : f32 to vector<8x1xf32>
    %105 = arith.subf %103, %104 : vector<8x1xf32>
    %106 = arith.select %100, %98, %105 : vector<8x1xi1>, vector<8x1xf32>
    %107 = vector.broadcast %10 : f32 to vector<8x1xf32>
    %108 = arith.mulf %58, %107 : vector<8x1xf32>
    %109 = vector.broadcast %15 : f32 to vector<8x1xf32>
    %110 = arith.mulf %70, %109 : vector<8x1xf32>
    %111 = arith.addf %108, %110 : vector<8x1xf32>
    %112 = vector.broadcast %20 : f32 to vector<8x1xf32>
    %113 = arith.mulf %82, %112 : vector<8x1xf32>
    %114 = arith.addf %111, %113 : vector<8x1xf32>
    %115 = vector.broadcast %25 : f32 to vector<8x1xf32>
    %116 = arith.mulf %94, %115 : vector<8x1xf32>
    %117 = arith.addf %114, %116 : vector<8x1xf32>
    %118 = vector.broadcast %30 : f32 to vector<8x1xf32>
    %119 = arith.mulf %106, %118 : vector<8x1xf32>
    %120 = arith.addf %117, %119 : vector<8x1xf32>
    %121 = vector.broadcast %35 : f32 to vector<8x1xf32>
    %122 = arith.addf %120, %121 : vector<8x1xf32>
    %cst_16 = arith.constant 0.000000e+00 : f32
    %123 = vector.broadcast %cst_16 : f32 to vector<8x1xf32>
    %124 = arith.cmpf ogt, %122, %123 : vector<8x1xf32>
    %cst_17 = arith.constant 0.000000e+00 : f32
    %125 = vector.broadcast %cst_17 : f32 to vector<8x1xf32>
    %126 = arith.minimumf %122, %125 : vector<8x1xf32>
    %127 = math.exp %126 : vector<8x1xf32>
    %cst_18 = arith.constant 1.000000e+00 : f32
    %128 = vector.broadcast %cst_18 : f32 to vector<8x1xf32>
    %129 = arith.subf %127, %128 : vector<8x1xf32>
    %130 = arith.select %124, %122, %129 : vector<8x1xi1>, vector<8x1xf32>
    %131 = vector.broadcast %40 : f32 to vector<8x1xf32>
    %132 = arith.mulf %131, %130 : vector<8x1xf32>
    %133 = vector.broadcast %11 : f32 to vector<8x1xf32>
    %134 = arith.mulf %58, %133 : vector<8x1xf32>
    %135 = vector.broadcast %16 : f32 to vector<8x1xf32>
    %136 = arith.mulf %70, %135 : vector<8x1xf32>
    %137 = arith.addf %134, %136 : vector<8x1xf32>
    %138 = vector.broadcast %21 : f32 to vector<8x1xf32>
    %139 = arith.mulf %82, %138 : vector<8x1xf32>
    %140 = arith.addf %137, %139 : vector<8x1xf32>
    %141 = vector.broadcast %26 : f32 to vector<8x1xf32>
    %142 = arith.mulf %94, %141 : vector<8x1xf32>
    %143 = arith.addf %140, %142 : vector<8x1xf32>
    %144 = vector.broadcast %31 : f32 to vector<8x1xf32>
    %145 = arith.mulf %106, %144 : vector<8x1xf32>
    %146 = arith.addf %143, %145 : vector<8x1xf32>
    %147 = vector.broadcast %36 : f32 to vector<8x1xf32>
    %148 = arith.addf %146, %147 : vector<8x1xf32>
    %cst_19 = arith.constant 0.000000e+00 : f32
    %149 = vector.broadcast %cst_19 : f32 to vector<8x1xf32>
    %150 = arith.cmpf ogt, %148, %149 : vector<8x1xf32>
    %cst_20 = arith.constant 0.000000e+00 : f32
    %151 = vector.broadcast %cst_20 : f32 to vector<8x1xf32>
    %152 = arith.minimumf %148, %151 : vector<8x1xf32>
    %153 = math.exp %152 : vector<8x1xf32>
    %cst_21 = arith.constant 1.000000e+00 : f32
    %154 = vector.broadcast %cst_21 : f32 to vector<8x1xf32>
    %155 = arith.subf %153, %154 : vector<8x1xf32>
    %156 = arith.select %150, %148, %155 : vector<8x1xi1>, vector<8x1xf32>
    %157 = vector.broadcast %41 : f32 to vector<8x1xf32>
    %158 = arith.mulf %157, %156 : vector<8x1xf32>
    %159 = arith.addf %132, %158 : vector<8x1xf32>
    %160 = vector.broadcast %12 : f32 to vector<8x1xf32>
    %161 = arith.mulf %58, %160 : vector<8x1xf32>
    %162 = vector.broadcast %17 : f32 to vector<8x1xf32>
    %163 = arith.mulf %70, %162 : vector<8x1xf32>
    %164 = arith.addf %161, %163 : vector<8x1xf32>
    %165 = vector.broadcast %22 : f32 to vector<8x1xf32>
    %166 = arith.mulf %82, %165 : vector<8x1xf32>
    %167 = arith.addf %164, %166 : vector<8x1xf32>
    %168 = vector.broadcast %27 : f32 to vector<8x1xf32>
    %169 = arith.mulf %94, %168 : vector<8x1xf32>
    %170 = arith.addf %167, %169 : vector<8x1xf32>
    %171 = vector.broadcast %32 : f32 to vector<8x1xf32>
    %172 = arith.mulf %106, %171 : vector<8x1xf32>
    %173 = arith.addf %170, %172 : vector<8x1xf32>
    %174 = vector.broadcast %37 : f32 to vector<8x1xf32>
    %175 = arith.addf %173, %174 : vector<8x1xf32>
    %cst_22 = arith.constant 0.000000e+00 : f32
    %176 = vector.broadcast %cst_22 : f32 to vector<8x1xf32>
    %177 = arith.cmpf ogt, %175, %176 : vector<8x1xf32>
    %cst_23 = arith.constant 0.000000e+00 : f32
    %178 = vector.broadcast %cst_23 : f32 to vector<8x1xf32>
    %179 = arith.minimumf %175, %178 : vector<8x1xf32>
    %180 = math.exp %179 : vector<8x1xf32>
    %cst_24 = arith.constant 1.000000e+00 : f32
    %181 = vector.broadcast %cst_24 : f32 to vector<8x1xf32>
    %182 = arith.subf %180, %181 : vector<8x1xf32>
    %183 = arith.select %177, %175, %182 : vector<8x1xi1>, vector<8x1xf32>
    %184 = vector.broadcast %42 : f32 to vector<8x1xf32>
    %185 = arith.mulf %184, %183 : vector<8x1xf32>
    %186 = arith.addf %159, %185 : vector<8x1xf32>
    %187 = vector.broadcast %13 : f32 to vector<8x1xf32>
    %188 = arith.mulf %58, %187 : vector<8x1xf32>
    %189 = vector.broadcast %18 : f32 to vector<8x1xf32>
    %190 = arith.mulf %70, %189 : vector<8x1xf32>
    %191 = arith.addf %188, %190 : vector<8x1xf32>
    %192 = vector.broadcast %23 : f32 to vector<8x1xf32>
    %193 = arith.mulf %82, %192 : vector<8x1xf32>
    %194 = arith.addf %191, %193 : vector<8x1xf32>
    %195 = vector.broadcast %28 : f32 to vector<8x1xf32>
    %196 = arith.mulf %94, %195 : vector<8x1xf32>
    %197 = arith.addf %194, %196 : vector<8x1xf32>
    %198 = vector.broadcast %33 : f32 to vector<8x1xf32>
    %199 = arith.mulf %106, %198 : vector<8x1xf32>
    %200 = arith.addf %197, %199 : vector<8x1xf32>
    %201 = vector.broadcast %38 : f32 to vector<8x1xf32>
    %202 = arith.addf %200, %201 : vector<8x1xf32>
    %cst_25 = arith.constant 0.000000e+00 : f32
    %203 = vector.broadcast %cst_25 : f32 to vector<8x1xf32>
    %204 = arith.cmpf ogt, %202, %203 : vector<8x1xf32>
    %cst_26 = arith.constant 0.000000e+00 : f32
    %205 = vector.broadcast %cst_26 : f32 to vector<8x1xf32>
    %206 = arith.minimumf %202, %205 : vector<8x1xf32>
    %207 = math.exp %206 : vector<8x1xf32>
    %cst_27 = arith.constant 1.000000e+00 : f32
    %208 = vector.broadcast %cst_27 : f32 to vector<8x1xf32>
    %209 = arith.subf %207, %208 : vector<8x1xf32>
    %210 = arith.select %204, %202, %209 : vector<8x1xi1>, vector<8x1xf32>
    %211 = vector.broadcast %43 : f32 to vector<8x1xf32>
    %212 = arith.mulf %211, %210 : vector<8x1xf32>
    %213 = arith.addf %186, %212 : vector<8x1xf32>
    %214 = vector.broadcast %14 : f32 to vector<8x1xf32>
    %215 = arith.mulf %58, %214 : vector<8x1xf32>
    %216 = vector.broadcast %19 : f32 to vector<8x1xf32>
    %217 = arith.mulf %70, %216 : vector<8x1xf32>
    %218 = arith.addf %215, %217 : vector<8x1xf32>
    %219 = vector.broadcast %24 : f32 to vector<8x1xf32>
    %220 = arith.mulf %82, %219 : vector<8x1xf32>
    %221 = arith.addf %218, %220 : vector<8x1xf32>
    %222 = vector.broadcast %29 : f32 to vector<8x1xf32>
    %223 = arith.mulf %94, %222 : vector<8x1xf32>
    %224 = arith.addf %221, %223 : vector<8x1xf32>
    %225 = vector.broadcast %34 : f32 to vector<8x1xf32>
    %226 = arith.mulf %106, %225 : vector<8x1xf32>
    %227 = arith.addf %224, %226 : vector<8x1xf32>
    %228 = vector.broadcast %39 : f32 to vector<8x1xf32>
    %229 = arith.addf %227, %228 : vector<8x1xf32>
    %cst_28 = arith.constant 0.000000e+00 : f32
    %230 = vector.broadcast %cst_28 : f32 to vector<8x1xf32>
    %231 = arith.cmpf ogt, %229, %230 : vector<8x1xf32>
    %cst_29 = arith.constant 0.000000e+00 : f32
    %232 = vector.broadcast %cst_29 : f32 to vector<8x1xf32>
    %233 = arith.minimumf %229, %232 : vector<8x1xf32>
    %234 = math.exp %233 : vector<8x1xf32>
    %cst_30 = arith.constant 1.000000e+00 : f32
    %235 = vector.broadcast %cst_30 : f32 to vector<8x1xf32>
    %236 = arith.subf %234, %235 : vector<8x1xf32>
    %237 = arith.select %231, %229, %236 : vector<8x1xi1>, vector<8x1xf32>
    %238 = vector.broadcast %44 : f32 to vector<8x1xf32>
    %239 = arith.mulf %238, %237 : vector<8x1xf32>
    %240 = arith.addf %213, %239 : vector<8x1xf32>
    %241 = vector.broadcast %45 : f32 to vector<8x1xf32>
    %242 = arith.addf %240, %241 : vector<8x1xf32>
    %c0_31 = arith.constant 0 : index
    %c0_32 = arith.constant 0 : index
    %243 = vector.load %arg3[%c0_31, %c0_32] : memref<8x1xf32, #tpu.memory_space<vmem>>, vector<8x1xf32>
    tpu.vector_store %arg3[%c0_31, %c0_32], %242 {strides = array<i32>} : memref<8x1xf32, #tpu.memory_space<vmem>>, vector<8x1xf32>,
    return
  }
  func.func @transform_0(%arg0: i32, %arg1: memref<46xf32, #tpu.memory_space<smem>>) -> (i32, i32) {
    %c0_i32 = arith.constant 0 : i32
    %c0_i32_0 = arith.constant 0 : i32
    return %c0_i32, %arg0 : i32, i32
  }
  func.func @transform_1(%arg0: i32, %arg1: memref<46xf32, #tpu.memory_space<smem>>) -> (i32, i32) {
    %c0_i32 = arith.constant 0 : i32
    %c0_i32_0 = arith.constant 0 : i32
    return %c0_i32, %arg0 : i32, i32
  }
}

</mosaic_0001>

<bundles_post_ra>
// kernel: tpu_custom_call.1
= control target key start
LH: loop header
LB: loop body
LE: loop exit
PB: predicated region body
PF: predicated region fallthrough
CT: control target
= control target key end

     0   :  { %s498_s0 = inlined_call_operand.vmem [shape: f32[46], index: 0, kind: input, shape index: {}]   ;;  %s499_s1 = inlined_call_operand.vmem [shape: f32[8,1], index: 1, kind: input, shape index: {}]   ;;  %s500_s2 = inlined_call_operand.vmem [shape: f32[8,1], index: 2, kind: output, shape index: {}]  }
   0x1   :  { %s7_s11 = sshll.u32 %s498_s0, 4  ;;  %s8_s11 = int_to_ptr.vmem [resolvable:$true] %s7_s11 }
   0x2   :  { %s320_s12 = scalar_lea.vmem %s8_s11, 16  ;;  %p325_p1 = scmp.lt.s32.totalorder %s8_s11, %s8_s11 }
   0x3   :  { %p321_p0 = scmp.ne.s32.totalorder %s8_s11, %s320_s12  ;;  %p326_p2 = scmp.lt.s32.totalorder %s320_s12, %s320_s12 }
   0x5   :  { %p327_p3 = por %p326_p2, %p325_p1 }
   0x7   :  { %p328_p4 = pnand %p327_p3, %p321_p0 }
   0x9   :  { %331 = shalt.err (!%p328_p4)  }
   0xa   :  { %s334_s13 = smov [#allocation3]  }
   0xb   :  { %10 = dma.vmem_to_smem %s8_s11, 16, %s334_s13, [#allocation2] }
   0xc   :  { %332 = dma.done.wait [#allocation2], 16 }
   0xd   :  { %333 = vsyncadd [#allocation2], 4294967280 }
   0xe   :  { %12 = sfence }
   0xf   :  { %s15_s14 = sld [smem:[#allocation3]]  ;;  %s244_s15 = sld [smem:[#allocation3 + $0x1]]  ;;  %v61_v0 = vld [vmem:[%s499_s1] sm:$0xff]  ;;  %vm238_vm10 = vcmask 7168  }
  0x10   :  { %s245_s16 = sld [smem:[#allocation3 + $0x2]]  ;;  %s246_s17 = sld [smem:[#allocation3 + $0x3]] }
  0x11   :  { %s353_s18 = sld [smem:[#allocation3 + $0x4]]  ;;  %s248_s0 = sld [smem:[#allocation3 + $0x5]] }
  0x12   :  { %s249_s19 = sld [smem:[#allocation3 + $0x6]]  ;;  %s250_s20 = sld [smem:[#allocation3 + $0x7]] }
  0x13   :  { %s355_s21 = sld [smem:[#allocation3 + $0x8]]  ;;  %s357_s22 = sld [smem:[#allocation3 + $0x9]] }
  0x14   :  { %s362_s25 = sld [smem:[#allocation3 + $0xa]]  ;;  %s364_s26 = sld [smem:[#allocation3 + $0xb]] }
  0x15   :  { %v62_v1 = vstv %s15_s14  ;;  %v72_v2 = vstv %s244_s15  ;;  %s366_s27 = sld [smem:[#allocation3 + $0xc]]  ;;  %s368_s28 = sld [smem:[#allocation3 + $0xd]] }
  0x16   :  { %v63_v3 = vmul.f32 %v62_v1, %v61_v0  ;;  %v73_v4 = vmul.f32 %v72_v2, %v61_v0  ;;  %v82_v5 = vstv %s245_s16  ;;  %v92_v6 = vstv %s246_s17  ;;  %s371_s1 = sld [smem:[#allocation3 + $0xe]]  ;;  %s373_s29 = sld [smem:[#allocation3 + $0xf]] }
  0x17   :  { %v64_v7 = vstv %s248_s0  ;;  %v83_v8 = vmul.f32 %v82_v5, %v61_v0  ;;  %v93_v9 = vmul.f32 %v92_v6, %v61_v0  ;;  %v102_v10 = vstv %s353_s18  ;;  %s377_s30 = sld [smem:[#allocation3 + $0x10]]  ;;  %s379_s3 = sld [smem:[#allocation3 + $0x11]] }
  0x18   :  { %v375_v11 = vadd.f32 %v64_v7, %v63_v3  ;;  %v74_v12 = vstv %s249_s19  ;;  %v84_v13 = vstv %s250_s20  ;;  %s384_s4 = sld [smem:[#allocation3 + $0x12]]  ;;  %s386_s5 = sld [smem:[#allocation3 + $0x13]]  ;;  %v103_v18 = vmul.f32 %v102_v10, %v61_v0 }
  0x19   :  { %v381_v14 = vadd.f32 %v74_v12, %v73_v4  ;;  %v94_v15 = vstv %s355_s21  ;;  %v389_v17 = vadd.f32 %v84_v13, %v83_v8  ;;  %s391_s6 = sld [smem:[#allocation3 + $0x14]]  ;;  %s393_s7 = sld [smem:[#allocation3 + $0x15]]  ;;  %v104_v21 = vstv %s357_s22 }
  0x1a   :  { %v67_v16 = vmin.f32 %v375_v11, 0.0  ;;  %v396_v20 = vadd.f32 %v94_v15, %v93_v9  ;;  %s399_s8 = sld [smem:[#allocation3 + $0x16]]  ;;  %s401_s9 = sld [smem:[#allocation3 + $0x17]]  ;;  %v412_v25 = vadd.f32 %v104_v21, %v103_v18  ;;  %vm66_vm0 = vcmp.gt.f32.partialorder %v375_v11, 0.0 }
  0x1b   :  { %v77_v19 = vmin.f32 %v381_v14, 0.0  ;;  %s403_s10 = sld [smem:[#allocation3 + $0x18]]  ;;  %s405_s11 = sld [smem:[#allocation3 + $0x19]]  ;;  %v87_v24 = vmin.f32 %v389_v17, 0.0  ;;  %vm76_vm1 = vcmp.gt.f32.partialorder %v381_v14, 0.0  ;;  %v112_v30 = vstv %s362_s25 }
  0x1c   :  { %v68_v22 = vmul.f32 1.442695, %v67_v16  ;;  %s407_s12 = sld [smem:[#allocation3 + $0x1a]]  ;;  %s409_s13 = sld [smem:[#allocation3 + $0x1b]]  ;;  %v97_v26 = vmin.f32 %v396_v20, 0.0  ;;  %v107_v29 = vmin.f32 %v412_v25, 0.0  ;;  %v114_v31 = vstv %s373_s29 }
  0x1d   :  { %v78_v23 = vmul.f32 1.442695, %v77_v19  ;;  %s414_s14 = sld [smem:[#allocation3 + $0x1c]]  ;;  %s416_s15 = sld [smem:[#allocation3 + $0x1d]]  ;;  %v88_v27 = vmul.f32 1.442695, %v87_v24  ;;  %v136_v32 = vstv %s364_s26  ;;  %v161_v33 = vstv %s366_s27 }
  0x1e   :  { %300 = vpow2.f32 %v68_v22  ;;  %s419_s16 = sld [smem:[#allocation3 + $0x1e]]  ;;  %s421_s17 = sld [smem:[#allocation3 + $0x1f]]  ;;  %v98_v28 = vmul.f32 1.442695, %v97_v26  ;;  %v108_v34 = vmul.f32 1.442695, %v107_v29  ;;  %v138_v35 = vstv %s377_s30 }
  0x1f   :  { %302 = vpow2.f32 %v78_v23  ;;  %s424_s18 = sld [smem:[#allocation3 + $0x20]]  ;;  %s426_s0 = sld [smem:[#allocation3 + $0x21]]  ;;  %v163_v36 = vstv %s379_s3  ;;  %v186_v37 = vstv %s368_s28  ;;  %vm86_vm2 = vcmp.gt.f32.partialorder %v389_v17, 0.0 }
  0x20   :  { %s428_s19 = sld [smem:[#allocation3 + $0x22]]  ;;  %s430_s20 = sld [smem:[#allocation3 + $0x23]]  ;;  %304 = vpow2.f32 %v88_v27  ;;  %vm96_vm3 = vcmp.gt.f32.partialorder %v396_v20, 0.0  ;;  %v188_v38 = vstv %s384_s4  ;;  %v211_v39 = vstv %s371_s1 }
  0x21   :  { %s435_s21 = sld [smem:[#allocation3 + $0x24]]  ;;  %s437_s22 = sld [smem:[#allocation3 + $0x25]]  ;;  %306 = vpow2.f32 %v98_v28  ;;  %v117_v40 = vstv %s391_s6  ;;  %v141_v41 = vstv %s393_s7  ;;  %v166_v42 = vstv %s399_s8 }
  0x22   :  { %308 = vpow2.f32 %v108_v34  ;;  %v120_v43 = vstv %s405_s11  ;;  %v191_v44 = vstv %s401_s9  ;;  %v213_v45 = vstv %s386_s5  ;;  %s478_s23 = sld [smem:[#allocation3 + $0x26]]  ;;  %s486_s24 = sld [smem:[#allocation3 + $0x27]] }
  0x23   :  { %v216_v46 = vstv %s403_s10  ;;  %vm106_vm4 = vcmp.gt.f32.partialorder %v412_v25, 0.0  ;;  %v144_v48 = vstv %s407_s12  ;;  %v169_v49 = vstv %s409_s13  ;;  %s283_s25 = sld [smem:[#allocation3 + $0x28]]  ;;  %s284_s26 = sld [smem:[#allocation3 + $0x29]] }
  0x24   :  { %v194_v50 = vstv %s414_s14  ;;  %v123_v53 = vstv %s419_s16  ;;  %v147_v54 = vstv %s421_s17  ;;  %v219_v55 = vstv %s416_s15  ;;  %s285_s27 = sld [smem:[#allocation3 + $0x2a]]  ;;  %s286_s28 = sld [smem:[#allocation3 + $0x2b]] }
  0x25   :  { %v172_v58 = vstv %s424_s18  ;;  %v197_v59 = vstv %s426_s0  ;;  %s492_s1 = sld [smem:[#allocation3 + $0x2c]]  ;;  %s288_s29 = sld [smem:[#allocation3 + $0x2d]] }
  0x26   :  { %v126_v57 = vstv %s430_s20  ;;  %v222_v63 = vstv %s428_s19 }
  0x27   :  { %v150_v61 = vstv %s435_s21  ;;  %v175_v62 = vstv %s437_s22 }
  0x28   :  { %v301_v47 = vpop.eup %300 }
  0x29   :  { %v303_v51 = vpop.eup %302  ;;  %v289_v52 = vadd.f32 -1.0, %v301_v47 }
  0x2a   :  { %v290_v56 = vadd.f32 -1.0, %v303_v51  ;;  %v305_v0 = vpop.eup %304 }
  0x2b   :  { %v71_v60 = vsel %vm66_vm0, %v375_v11, %v289_v52  ;;  %v307_v5 = vpop.eup %306  ;;  %v291_v6 = vadd.f32 -1.0, %v305_v0 }
  0x2c   :  { %v81_v1 = vsel %vm76_vm1, %v381_v14, %v290_v56  ;;  %v113_v2 = vmul.f32 %v112_v30, %v71_v60  ;;  %v137_v3 = vmul.f32 %v136_v32, %v71_v60  ;;  %v162_v4 = vmul.f32 %v161_v33, %v71_v60  ;;  %v309_v14 = vpop.eup %308 }
  0x2d   :  { %v115_v7 = vmul.f32 %v114_v31, %v81_v1  ;;  %v139_v8 = vmul.f32 %v138_v35, %v81_v1  ;;  %v164_v9 = vmul.f32 %v163_v36, %v81_v1  ;;  %v292_v10 = vadd.f32 -1.0, %v307_v5 }
  0x2e   :  { %v187_v12 = vmul.f32 %v186_v37, %v71_v60  ;;  %v189_v13 = vmul.f32 %v188_v38, %v81_v1  ;;  %v212_v11 = vmul.f32 %v211_v39, %v71_v60  ;;  %v91_v15 = vsel %vm86_vm2, %v389_v17, %v291_v6 }
  0x2f   :  { %v116_v16 = vadd.f32 %v115_v7, %v113_v2  ;;  %v140_v18 = vadd.f32 %v139_v8, %v137_v3  ;;  %v165_v19 = vadd.f32 %v164_v9, %v162_v4  ;;  %v101_v21 = vsel %vm96_vm3, %v396_v20, %v292_v10 }
  0x30   :  { %v118_v22 = vmul.f32 %v117_v40, %v91_v15  ;;  %v142_v23 = vmul.f32 %v141_v41, %v91_v15  ;;  %v167_v24 = vmul.f32 %v166_v42, %v91_v15  ;;  %v293_v26 = vadd.f32 -1.0, %v309_v14 }
  0x31   :  { %v121_v27 = vmul.f32 %v120_v43, %v101_v21  ;;  %v145_v28 = vmul.f32 %v144_v48, %v101_v21  ;;  %v170_v29 = vmul.f32 %v169_v49, %v101_v21  ;;  %v190_v32 = vadd.f32 %v189_v13, %v187_v12 }
  0x32   :  { %v119_v30 = vadd.f32 %v118_v22, %v116_v16  ;;  %v143_v31 = vadd.f32 %v142_v23, %v140_v18  ;;  %v168_v17 = vadd.f32 %v167_v24, %v165_v19  ;;  %v111_v33 = vsel %vm106_vm4, %v412_v25, %v293_v26 }
  0x33   :  { %v192_v34 = vmul.f32 %v191_v44, %v91_v15  ;;  %v195_v35 = vmul.f32 %v194_v50, %v101_v21  ;;  %v214_v36 = vmul.f32 %v213_v45, %v81_v1  ;;  %v124_v37 = vmul.f32 %v123_v53, %v111_v33 }
  0x34   :  { %v122_v20 = vadd.f32 %v121_v27, %v119_v30  ;;  %v146_v38 = vadd.f32 %v145_v28, %v143_v31  ;;  %v148_v39 = vmul.f32 %v147_v54, %v111_v33  ;;  %v171_v40 = vadd.f32 %v170_v29, %v168_v17 }
  0x35   :  { %v173_v41 = vmul.f32 %v172_v58, %v111_v33  ;;  %v193_v42 = vadd.f32 %v192_v34, %v190_v32  ;;  %v198_v43 = vmul.f32 %v197_v59, %v111_v33  ;;  %v215_v49 = vadd.f32 %v214_v36, %v212_v11 }
  0x36   :  { %v125_v47 = vadd.f32 %v124_v37, %v122_v20  ;;  %v149_v48 = vadd.f32 %v148_v39, %v146_v38  ;;  %v217_v25 = vmul.f32 %v216_v46, %v91_v15  ;;  %v220_v45 = vmul.f32 %v219_v55, %v101_v21 }
  0x37   :  { %v174_v51 = vadd.f32 %v173_v41, %v171_v40  ;;  %v196_v44 = vadd.f32 %v195_v35, %v193_v42  ;;  %v200_v56 = vstv %s478_s23  ;;  %v223_v54 = vmul.f32 %v222_v63, %v111_v33 }
  0x38   :  { %v127_v50 = vadd.f32 %v126_v57, %v125_v47  ;;  %v151_v52 = vadd.f32 %v150_v61, %v149_v48  ;;  %v218_v53 = vadd.f32 %v217_v25, %v215_v49  ;;  %v225_v6 = vstv %s486_s24 }
  0x39   :  { %v176_v60 = vadd.f32 %v175_v62, %v174_v51  ;;  %v199_v0 = vadd.f32 %v198_v43, %v196_v44  ;;  %v134_v12 = vstv %s283_s25  ;;  %v158_v15 = vstv %s284_s26 }
  0x3a   :  { %v129_v1 = vmin.f32 %v127_v50, 0.0  ;;  %v153_v58 = vmin.f32 %v151_v52, 0.0  ;;  %v221_v3 = vadd.f32 %v220_v45, %v218_v53  ;;  %vm128_vm5 = vcmp.gt.f32.partialorder %v127_v50, 0.0 }
  0x3b   :  { %v178_v2 = vmin.f32 %v176_v60, 0.0  ;;  %v201_v59 = vadd.f32 %v200_v56, %v199_v0  ;;  %vm152_vm6 = vcmp.gt.f32.partialorder %v151_v52, 0.0  ;;  %vm177_vm7 = vcmp.gt.f32.partialorder %v176_v60, 0.0 }
  0x3c   :  { %v130_v4 = vmul.f32 1.442695, %v129_v1  ;;  %v154_v5 = vmul.f32 1.442695, %v153_v58  ;;  %v224_v8 = vadd.f32 %v223_v54, %v221_v3  ;;  %v183_v14 = vstv %s285_s27 }
  0x3d   :  { %v179_v46 = vmul.f32 1.442695, %v178_v2  ;;  %v203_v7 = vmin.f32 %v201_v59, 0.0  ;;  %vm202_vm8 = vcmp.gt.f32.partialorder %v201_v59, 0.0  ;;  %v208_v24 = vstv %s286_s28 }
  0x3e   :  { %310 = vpow2.f32 %v130_v4  ;;  %v226_v57 = vadd.f32 %v225_v6, %v224_v8  ;;  %v233_v33 = vstv %s492_s1  ;;  %v236_v37 = vstv %s288_s29 }
  0x3f   :  { %312 = vpow2.f32 %v154_v5  ;;  %v204_v55 = vmul.f32 1.442695, %v203_v7 }
  0x40   :  { %314 = vpow2.f32 %v179_v46  ;;  %v228_v61 = vmin.f32 %v226_v57, 0.0  ;;  %vm227_vm9 = vcmp.gt.f32.partialorder %v226_v57, 0.0 }
  0x41   :  { %316 = vpow2.f32 %v204_v55 }
  0x42   :  { %v229_v62 = vmul.f32 1.442695, %v228_v61 }
  0x44   :  { %318 = vpow2.f32 %v229_v62 }
  0x48   :  { %v311_v63 = vpop.eup %310 }
  0x49   :  { %v313_v9 = vpop.eup %312  ;;  %v294_v10 = vadd.f32 -1.0, %v311_v63 }
  0x4a   :  { %v315_v13 = vpop.eup %314  ;;  %v295_v11 = vadd.f32 -1.0, %v313_v9 }
  0x4b   :  { %v317_v16 = vpop.eup %316  ;;  %v133_v18 = vsel %vm128_vm5, %v127_v50, %v294_v10  ;;  %v296_v19 = vadd.f32 -1.0, %v315_v13 }
  0x4c   :  { %v135_v21 = vmul.f32 %v134_v12, %v133_v18  ;;  %v157_v22 = vsel %vm152_vm6, %v151_v52, %v295_v11  ;;  %v297_v23 = vadd.f32 -1.0, %v317_v16 }
  0x4d   :  { %v159_v26 = vmul.f32 %v158_v15, %v157_v22  ;;  %v182_v27 = vsel %vm177_vm7, %v176_v60, %v296_v19 }
  0x4e   :  { %v184_v28 = vmul.f32 %v183_v14, %v182_v27  ;;  %v207_v29 = vsel %vm202_vm8, %v201_v59, %v297_v23  ;;  %v319_v30 = vpop.eup %318 }
  0x4f   :  { %v160_v31 = vadd.f32 %v159_v26, %v135_v21  ;;  %v209_v17 = vmul.f32 %v208_v24, %v207_v29  ;;  %v298_v32 = vadd.f32 -1.0, %v319_v30 }
  0x51   :  { %v185_v34 = vadd.f32 %v184_v28, %v160_v31  ;;  %v232_v35 = vsel %vm227_vm9, %v226_v57, %v298_v32 }
  0x52   :  { %v234_v20 = vmul.f32 %v233_v33, %v232_v35 }
  0x53   :  { %v210_v36 = vadd.f32 %v209_v17, %v185_v34 }
  0x55   :  { %v235_v38 = vadd.f32 %v234_v20, %v210_v36 }
  0x57   :  { %v237_v39 = vadd.f32 %v236_v37, %v235_v38 }
  0x59   :  { %239 = vst.msk [vmem:[%s500_s2] sm:$0xff] %vm238_vm10, %v237_v39 }

</bundles_post_ra>
